<compile_context>
chip_gen: v5e
topology: v5e:2x2
jax: 0.10.0
libtpu: 0.0.40
codegen_flags: <defaults>
</compile_context>

<pallas_src>
import jax
import jax.numpy as jnp
from jax.experimental import pallas as pl
from jax.experimental.pallas import tpu as pltpu

MAX_ROW_TILE = 2048    # big tiles amortize the ~0.35 us per-grid-step overhead
MIN_SPLIT_ROWS = 512   # below this, splitting into multiple tiles costs more than it gains


def _round_up(x, m):
    return (x + m - 1) // m * m


def _sublane_multiple(dtype):
    # Minimum second-to-last block-dim multiple: 8 (4-byte), 16 (2-byte), 32 (1-byte).
    itemsize = jnp.dtype(dtype).itemsize
    return max(8, 32 // max(itemsize, 1))


def _choose_row_tile(B, dtype):
    """Pick a batch tile: one tile for small B, >=2 balanced tiles for large B."""
    if B <= MIN_SPLIT_ROWS:
        return B  # block == full array dim along the batch axis -> always valid
    sub = _sublane_multiple(dtype)
    n_tiles = max(2, pl.cdiv(B, MAX_ROW_TILE))   # >=2 steps -> both v7x TensorCores busy
    tb = _round_up(pl.cdiv(B, n_tiles), sub)     # keep sublane-aligned batch tiles
    return min(tb, B)


def dqn_mlp_kernel(x_ref, w1_ref, b1_ref, w2_ref, b2_ref, o_ref):
    # x: [TB, C_in] (native dtype), w1: [C_in, H], b1: [1, H],
    # w2: [H, A], b2: [1, A], o: [TB, A]
    x = x_ref[...].astype(jnp.float32)                       # matches torch `x.float()`
    h = jnp.tanh(
        jnp.dot(x, w1_ref[...], preferred_element_type=jnp.float32) + b1_ref[...]
    )
    q = jnp.dot(h, w2_ref[...], preferred_element_type=jnp.float32) + b2_ref[...]
    o_ref[...] = q.astype(o_ref.dtype)


def dqn_entity_forward(x, w1, b1, w2, b2):
    """Q = tanh(x @ W1 + b1) @ W2 + b2 as a single batch-tiled Pallas call.

    x:  [B, C_in] (any float/int dtype; cast to f32 in-kernel)
    w1: [C_in, 16], b1: [1, 16] (or [16]), w2: [16, A], b2: [1, A] (or [A])
    returns [B, A] float32.
    """
    B, C_in = x.shape
    H = w1.shape[1]
    A = w2.shape[1]

    w1 = w1.astype(jnp.float32)
    b1 = b1.reshape(1, H).astype(jnp.float32)
    w2 = w2.astype(jnp.float32)
    b2 = b2.reshape(1, A).astype(jnp.float32)

    TB = _choose_row_tile(B, x.dtype)
    grid = (pl.cdiv(B, TB),)   # ragged last tile handled by Pallas block masking

    cost = pl.CostEstimate(
        flops=2 * B * (C_in * H + H * A),
        transcendentals=B * H,
        bytes_accessed=(x.size * x.dtype.itemsize
                        + 4 * (w1.size + b1.size + w2.size + b2.size)
                        + 4 * B * A),
    )

    return pl.pallas_call(
        dqn_mlp_kernel,
        out_shape=jax.ShapeDtypeStruct((B, A), jnp.float32),
        grid=grid,
        in_specs=[
            # x tile walks the batch; weights/biases are one VMEM-resident block.
            pl.BlockSpec((TB, C_in), lambda i: (i, 0)),
            pl.BlockSpec((C_in, H), lambda i: (0, 0)),
            pl.BlockSpec((1, H), lambda i: (0, 0)),
            pl.BlockSpec((H, A), lambda i: (0, 0)),
            pl.BlockSpec((1, A), lambda i: (0, 0)),
        ],
        out_specs=pl.BlockSpec((TB, A), lambda i: (i, 0)),
        compiler_params=pltpu.CompilerParams(
            dimension_semantics=("parallel",),  # shard batch tiles across v7x's 2 TCs
        ),
        cost_estimate=cost,
    )(x, w1, b1, w2, b2)


# jit the wrapper (tile choice is trace-time; no per-call padding work remains).
dqn_entity_forward_jit = jax.jit(dqn_entity_forward)


def init_linear_params(key, fan_in, fan_out):
    """Mimics torch.nn.Linear default init: U(-1/sqrt(fan_in), 1/sqrt(fan_in)).
    Stored as [in, out] so the kernel computes x @ W + b directly."""
    kw, kb = jax.random.split(key)
    bound = 1.0 / jnp.sqrt(jnp.float32(fan_in))
    w = jax.random.uniform(kw, (fan_in, fan_out), jnp.float32, -bound, bound)
    b = jax.random.uniform(kb, (1, fan_out), jnp.float32, -bound, bound)
    return w, b


if __name__ == "__main__":
    # Shapes consistent with the module:
    #   amountInputChannels = 32, hidden = 16 (fixed by nn.Sequential), numberOfActions = 4
    amount_input_channels = 32
    hidden = 16
    number_of_actions = 4

    key = jax.random.PRNGKey(0)
    kx, k1, k2, kx2 = jax.random.split(key, 4)

    w1, b1 = init_linear_params(k1, amount_input_channels, hidden)
    w2, b2 = init_linear_params(k2, hidden, number_of_actions)

    # --- small-batch check (B=8, single grid step) ---
    B = 8
    x = jax.random.normal(kx, (B, amount_input_channels), jnp.float32)
    out = jax.block_until_ready(dqn_entity_forward_jit(x, w1, b1, w2, b2))
    ref = jnp.tanh(x @ w1 + b1) @ w2 + b2
    assert out.shape == (B, number_of_actions)
    assert jnp.allclose(out, ref, atol=1e-5, rtol=1e-5)

    # --- larger-batch check: 2 balanced tiles (TB=264), ragged last tile, no jnp.pad ---
    B2 = 520
    x2 = jax.random.normal(kx2, (B2, amount_input_channels), jnp.float32)
    out2 = jax.block_until_ready(dqn_entity_forward_jit(x2, w1, b1, w2, b2))
    ref2 = jnp.tanh(x2 @ w1 + b1) @ w2 + b2
    assert out2.shape == (B2, number_of_actions)
    assert jnp.allclose(out2, ref2, atol=1e-5, rtol=1e-5)

    print("KERNEL_OK")
</pallas_src>

<mosaic_0001>
module attributes {stable_mosaic.version = 11 : i64} {
  func.func @dqn_mlp_kernel(%arg0: i32, %arg1: memref<8x32xf32, #tpu.memory_space<vmem>>, %arg2: memref<32x16xf32, #tpu.memory_space<vmem>>, %arg3: memref<1x16xf32, #tpu.memory_space<vmem>>, %arg4: memref<16x4xf32, #tpu.memory_space<vmem>>, %arg5: memref<1x4xf32, #tpu.memory_space<vmem>>, %arg6: memref<8x4xf32, #tpu.memory_space<vmem>>) attributes {dimension_semantics = [#tpu.dimension_semantics<parallel>], iteration_bounds = array<i64: 1>, scalar_prefetch = 0 : i64, scratch_operands = 0 : i64, tpu.core_type = #tpu.core_type<tc>, window_params = [{transform_indices = @transform_0, window_bounds = array<i64: 8, 32>}, {pipeline_mode = #tpu.pipeline_mode<synchronous>, transform_indices = @transform_1, window_bounds = array<i64: 32, 16>}, {pipeline_mode = #tpu.pipeline_mode<synchronous>, transform_indices = @transform_2, window_bounds = array<i64: 1, 16>}, {pipeline_mode = #tpu.pipeline_mode<synchronous>, transform_indices = @transform_3, window_bounds = array<i64: 16, 4>}, {pipeline_mode = #tpu.pipeline_mode<synchronous>, transform_indices = @transform_4, window_bounds = array<i64: 1, 4>}, {transform_indices = @transform_5, window_bounds = array<i64: 8, 4>}]} {
    %c0 = arith.constant 0 : index
    %c0_0 = arith.constant 0 : index
    %0 = vector.load %arg1[%c0, %c0_0] : memref<8x32xf32, #tpu.memory_space<vmem>>, vector<8x32xf32>
    %c0_1 = arith.constant 0 : index
    %c0_2 = arith.constant 0 : index
    %1 = vector.load %arg2[%c0_1, %c0_2] : memref<32x16xf32, #tpu.memory_space<vmem>>, vector<32x16xf32>
    %cst = arith.constant dense<0.000000e+00> : vector<8x16xf32>
    %2 = tpu.matmul %0, %1, %cst {dimension_numbers = #tpu.dot_dimension_numbers<[1], [0], [0], [1], [0, 0, 1, 1], [], []>} : vector<8x32xf32>, vector<32x16xf32>, vector<8x16xf32> -> vector<8x16xf32>
    %c0_3 = arith.constant 0 : index
    %c0_4 = arith.constant 0 : index
    %3 = vector.load %arg3[%c0_3, %c0_4] : memref<1x16xf32, #tpu.memory_space<vmem>>, vector<1x16xf32>
    %4 = vector.broadcast %3 : vector<1x16xf32> to vector<8x16xf32>
    %5 = arith.addf %2, %4 : vector<8x16xf32>
    %6 = math.tanh %5 : vector<8x16xf32>
    %c0_5 = arith.constant 0 : index
    %c0_6 = arith.constant 0 : index
    %7 = vector.load %arg4[%c0_5, %c0_6] : memref<16x4xf32, #tpu.memory_space<vmem>>, vector<16x4xf32>
    %cst_7 = arith.constant dense<0.000000e+00> : vector<8x4xf32>
    %8 = tpu.matmul %6, %7, %cst_7 {dimension_numbers = #tpu.dot_dimension_numbers<[1], [0], [0], [1], [0, 0, 1, 1], [], []>} : vector<8x16xf32>, vector<16x4xf32>, vector<8x4xf32> -> vector<8x4xf32>
    %c0_8 = arith.constant 0 : index
    %c0_9 = arith.constant 0 : index
    %9 = vector.load %arg5[%c0_8, %c0_9] : memref<1x4xf32, #tpu.memory_space<vmem>>, vector<1x4xf32>
    %10 = vector.broadcast %9 : vector<1x4xf32> to vector<8x4xf32>
    %11 = arith.addf %8, %10 : vector<8x4xf32>
    %c0_10 = arith.constant 0 : index
    %c0_11 = arith.constant 0 : index
    %12 = vector.load %arg6[%c0_10, %c0_11] : memref<8x4xf32, #tpu.memory_space<vmem>>, vector<8x4xf32>
    tpu.vector_store %arg6[%c0_10, %c0_11], %11 {strides = array<i32>} : memref<8x4xf32, #tpu.memory_space<vmem>>, vector<8x4xf32>,
    return
  }
  func.func @transform_0(%arg0: i32) -> (i32, i32) {
    %c0_i32 = arith.constant 0 : i32
    %c0_i32_0 = arith.constant 0 : i32
    return %arg0, %c0_i32 : i32, i32
  }
  func.func @transform_1(%arg0: i32) -> (i32, i32) {
    %c0_i32 = arith.constant 0 : i32
    %c0_i32_0 = arith.constant 0 : i32
    %c0_i32_1 = arith.constant 0 : i32
    return %c0_i32, %c0_i32_0 : i32, i32
  }
  func.func @transform_2(%arg0: i32) -> (i32, i32) {
    %c0_i32 = arith.constant 0 : i32
    %c0_i32_0 = arith.constant 0 : i32
    %c0_i32_1 = arith.constant 0 : i32
    return %c0_i32, %c0_i32_0 : i32, i32
  }
  func.func @transform_3(%arg0: i32) -> (i32, i32) {
    %c0_i32 = arith.constant 0 : i32
    %c0_i32_0 = arith.constant 0 : i32
    %c0_i32_1 = arith.constant 0 : i32
    return %c0_i32, %c0_i32_0 : i32, i32
  }
  func.func @transform_4(%arg0: i32) -> (i32, i32) {
    %c0_i32 = arith.constant 0 : i32
    %c0_i32_0 = arith.constant 0 : i32
    %c0_i32_1 = arith.constant 0 : i32
    return %c0_i32, %c0_i32_0 : i32, i32
  }
  func.func @transform_5(%arg0: i32) -> (i32, i32) {
    %c0_i32 = arith.constant 0 : i32
    %c0_i32_0 = arith.constant 0 : i32
    return %arg0, %c0_i32 : i32, i32
  }
}

</mosaic_0001>

<bundles_post_ra>
// kernel: dqn_entity_forward.1
= control target key start
LH: loop header
LB: loop body
LE: loop exit
PB: predicated region body
PF: predicated region fallthrough
CT: control target
= control target key end

     0   :  { %vm29_vm0 = vcmask 261120   ;;  %vm60_vm1 = vcmask 130048   ;;  %vm84_vm2 = vcmask 31744   ;;  %s156_s1 = inlined_call_operand.vmem [shape: f32[32,16], index: 1, kind: input, shape index: {}]   ;;  %s157_s2 = inlined_call_operand.vmem [shape: f32[1,16], index: 2, kind: input, shape index: {}]   ;;  %s158_s0 = inlined_call_operand.vmem [shape: f32[8,32], index: 0, kind: input, shape index: {}]   ;;  %s159_s4 = inlined_call_operand.vmem [shape: f32[1,4], index: 4, kind: input, shape index: {}]   ;;  %s160_s3 = inlined_call_operand.vmem [shape: f32[16,4], index: 3, kind: input, shape index: {}]   ;;  %s161_s5 = inlined_call_operand.vmem [shape: f32[8,4], index: 5, kind: output, shape index: {}]  }
   0x1   :  { %v24_v0 = vld [vmem:[%s156_s1 + $0x18] sm:$0xff]  ;;  %v23_v1 = vld [vmem:[%s156_s1 + $0x10] sm:$0xff]  ;;  %v22_v2 = vld [vmem:[%s156_s1 + $0x8] sm:$0xff] }
   0x2   :  { %45 = vmatpush.msra.mxu0 %v24_v0  ;;  %v21_v3 = vld [vmem:[%s156_s1] sm:$0xff]  ;;  %v55_v5 = vld [vmem:[%s160_s3 + $0x8] sm:$0xff] }
   0x3   :  { %v20_v4 = vld [vmem:[%s158_s0] sm:$0xff]  ;;  %78 = vmatpush.msra.mxu1 %v55_v5 }
   0x4   :  { %46 = vmatpush.msra.mxu0 %v23_v1  ;;  %v54_v6 = vld [vmem:[%s160_s3] sm:$0xff] }
   0x5   :  { %79 = vmatpush.msra.mxu1 %v54_v6  ;;  %v92_v7 = vld [vmem:[%s157_s2] ss:$0 sm:$0xff] }
   0x6   :  { %47 = vmatpush.msra.mxu0 %v22_v2  ;;  %v93_v11 = vld [vmem:[%s159_s4] ss:$0 sm:$0xff] }
   0x8   :  { %48 = vmatpush.msra.mxu0 %v21_v3 }
   0x9   :  { %90 = vmatmul.msk.f32.vlgmr.msra.gmra.mxu0 %vm29_vm0, %v20_v4 }
  0x86   :  { %v50_v8 = vpop.f32.mrf.mxu0 }
  0x87   :  { %v51_v9 = vadd.f32 %v92_v7, %v50_v8 }
  0x89   :  { %94 = vtanh.f32 %v51_v9 }
  0x8f   :  { %v95_v10 = vpop.eup %94 }
  0x90   :  { %91 = vmatmul.msk.f32.vlgmr.msra.gmra.mxu1 %vm60_vm1, %v95_v10 }
 0x10d   :  { %v81_v12 = vpop.f32.mrf.mxu1 }
 0x10e   :  { %v82_v13 = vadd.f32 %v93_v11, %v81_v12 }
 0x110   :  { %85 = vst.msk [vmem:[%s161_s5] sm:$0xff] %vm84_vm2, %v82_v13 }

</bundles_post_ra>
